<compile_context>
chip_gen: v7x
topology: tpu7x:2x2x1
jax: 0.10.0
libtpu: 0.0.40
codegen_flags: <defaults>
</compile_context>

<pallas_src>
import math
import jax
import jax.numpy as jnp
from jax.experimental import pallas as pl
from jax.experimental.pallas import tpu as pltpu


# ----------------------------------------------------------------------------- kernel
def attention_encoder_kernel(
    x_ref, q_ref,
    wkv_ref, bkv_ref,     # fused [fc_key | fc_value] -> result columns [value | key]
    wq_ref, bq_ref,       # fc_query (1/sqrt(H) pre-folded into weight & bias)
    w1_ref, b1_ref,       # fc1
    w2_ref, b2_ref,       # fc2 (output dim zero-padded to O_pad, lane-dense)
    out_ref,
):
    TB, S, F = x_ref.shape
    _, Q, QD = q_ref.shape
    H = wq_ref.shape[1]
    cd = wkv_ref.dtype            # MXU compute dtype (bf16)
    f32 = jnp.float32

    # Inputs arrive in f32; cast to bf16 in-kernel (VPU), right before the MXU.
    # Batch is flattened into the matmul M dimension for all dense projections.
    x2d = x_ref[...].reshape(TB * S, F).astype(cd)      # [TB*S, F]
    q2d = q_ref[...].reshape(TB * Q, QD).astype(cd)     # [TB*Q, QD]

    # Fused key/value projection: one [F, 2H] matmul, split the f32 result.
    xkv = jnp.dot(x2d, wkv_ref[...], preferred_element_type=f32) + bkv_ref[...]
    x_value = xkv[:, :H].reshape(TB, S, H)              # fc_key output  (feeds value)
    x_key   = xkv[:, H:].reshape(TB, S, H)              # fc_value output (feeds key)

    x_query = (jnp.dot(q2d, wq_ref[...], preferred_element_type=f32)
               + bq_ref[...]).reshape(TB, Q, H)

    # Scaled dot-product attention (scale already folded into wq/bq).
    # einsum contracts on H directly -> no materialized transpose of x_key.
    score = jnp.einsum("bqh,bkh->bqk", x_query.astype(cd), x_key.astype(cd),
                       preferred_element_type=f32)                       # [TB, Q, S]
    score = score - jnp.max(score, axis=-1, keepdims=True)
    p = jnp.exp(score)
    attn = p * pl.reciprocal(jnp.sum(p, axis=-1, keepdims=True), approx=True)
    context = jnp.einsum("bqk,bkh->bqh", attn.astype(cd), x_value.astype(cd),
                         preferred_element_type=f32)                     # [TB, Q, H]

    # MLP head: relu(fc1) -> fc2 (output padded to O_pad lanes), batch in M again.
    ctx2d = context.reshape(TB * Q, H).astype(cd)
    h = jnp.dot(ctx2d, w1_ref[...], preferred_element_type=f32) + b1_ref[...]
    h = jnp.maximum(h, 0.0)
    out = jnp.dot(h.astype(cd), w2_ref[...], preferred_element_type=f32) + b2_ref[...]

    out_ref[...] = out.astype(out_ref.dtype)     # single lane-dense [TB*Q, O_pad] store


# ----------------------------------------------------------------------------- params
def init_params(key, in_features, query_dim, num_hidden_units, out_features):
    """Deterministic synthetic init. Weights [in_dim, out_dim]; biases [1, out_dim]."""
    ks = jax.random.split(key, 10)
    def lin(kw, kb, fan_in, fan_out):
        bound = 1.0 / math.sqrt(fan_in)
        w = jax.random.uniform(kw, (fan_in, fan_out), jnp.float32, -bound, bound)
        b = jax.random.uniform(kb, (1, fan_out), jnp.float32, -bound, bound)
        return w, b
    wk, bk = lin(ks[0], ks[1], in_features, num_hidden_units)        # fc_key
    wv, bv = lin(ks[2], ks[3], in_features, num_hidden_units)        # fc_value
    wq, bq = lin(ks[4], ks[5], query_dim, num_hidden_units)          # fc_query
    w1, b1 = lin(ks[6], ks[7], num_hidden_units, num_hidden_units)   # fc1
    w2, b2 = lin(ks[8], ks[9], num_hidden_units, out_features)       # fc2
    return (wk, bk, wv, bv, wq, bq, w1, b1, w2, b2)


def prepare_params(params, compute_dtype=jnp.bfloat16):
    """One-time prep (hoisted out of the per-call path):
       fold 1/sqrt(H) into the query projection, fuse fc_key|fc_value, zero-pad
       fc2's output dim to a lane-dense multiple of 128, cast weights to bf16."""
    wk, bk, wv, bv, wq, bq, w1, b1, w2, b2 = params
    H = wk.shape[1]
    O = w2.shape[1]
    inv_sqrt = jnp.float32(1.0 / math.sqrt(H))
    wq = wq * inv_sqrt
    bq = bq * inv_sqrt

    # Fused [fc_key | fc_value]: result columns [0:H) -> value, [H:2H) -> key.
    wkv = jnp.concatenate([wk, wv], axis=1)      # [F, 2H]
    bkv = jnp.concatenate([bk, bv], axis=1)      # [1, 2H]

    # Pad fc2 output dim to a multiple of 128 so the output store is lane-dense.
    O_pad = ((O + 127) // 128) * 128
    w2p = jnp.zeros((w2.shape[0], O_pad), jnp.float32).at[:, :O].set(w2)
    b2p = jnp.zeros((1, O_pad), jnp.float32).at[:, :O].set(b2)

    c = lambda w: w.astype(compute_dtype)        # weights bf16, biases stay f32
    return dict(
        wkv=c(wkv), bkv=bkv, wq=c(wq), bq=bq,
        w1=c(w1), b1=b1, w2=c(w2p), b2=b2p,
        H=H, O=O, O_pad=O_pad,
    )


# ----------------------------------------------------------------------------- wrapper
def _num_tensorcores_per_chip():
    """2 on v7x (dual-TensorCore), 1 on v5e/v6e."""
    try:
        kind = (getattr(jax.devices()[0], "device_kind", "") or "").lower()
        if "v7" in kind:
            return 2
    except Exception:
        pass
    return 1


def attention_encoder(x, query, prepared, *, block_b=None):
    """x: [B, S, F] f32, query: [B, Q, QD] f32 -> [B, Q, out_features] f32."""
    B, S, F = x.shape
    _, Q, QD = query.shape
    H, O, O_pad = prepared["H"], prepared["O"], prepared["O_pad"]
    wkv, bkv = prepared["wkv"], prepared["bkv"]
    wq, bq = prepared["wq"], prepared["bq"]
    w1, b1 = prepared["w1"], prepared["b1"]
    w2, b2 = prepared["w2"], prepared["b2"]

    n_tc = _num_tensorcores_per_chip()
    if block_b is None:
        if n_tc > 1 and B >= 2:
            # Dual-TC (v7x): exactly two big blocks, one per TensorCore.
            block_b = max(1, B // 2)
            while B % block_b != 0:
                block_b -= 1
        else:
            # Single-TC (v5e/v6e): the grid is a serial loop -> one big block
            # maximizes MXU M-occupancy and avoids per-step overhead.
            block_b = B
    assert B % block_b == 0
    grid_b = B // block_b
    # Output row-block must be sublane aligned (or cover the full array).
    assert (block_b * Q) % 8 == 0 or grid_b == 1

    if grid_b >= 2 and n_tc > 1:
        semantics = (pltpu.CORE_PARALLEL,)       # actually split across v7x's 2 TCs
    elif grid_b >= 2:
        semantics = ("parallel",)
    else:
        semantics = ("arbitrary",)

    def build(single_buffer_weights, sem):
        if single_buffer_weights:
            # Constant-index weight/bias blocks: single-buffer (double-buffering
            # a constant block is pure VMEM waste).
            wspec = lambda a: pl.BlockSpec(a.shape, lambda b: (0, 0),
                                           pipeline_mode=pl.Buffered(1))
        else:
            wspec = lambda a: pl.BlockSpec(a.shape, lambda b: (0, 0))
        return pl.pallas_call(
            attention_encoder_kernel,
            out_shape=jax.ShapeDtypeStruct((B * Q, O_pad), jnp.float32),
            grid_spec=pltpu.PrefetchScalarGridSpec(
                num_scalar_prefetch=0,
                grid=(grid_b,),
                in_specs=[
                    pl.BlockSpec((block_b, S, F), lambda b: (b, 0, 0)),
                    pl.BlockSpec((block_b, Q, QD), lambda b: (b, 0, 0)),
                    wspec(wkv), wspec(bkv),
                    wspec(wq), wspec(bq),
                    wspec(w1), wspec(b1),
                    wspec(w2), wspec(b2),
                ],
                # Lane-dense output slab: last dim O_pad is a multiple of 128.
                out_specs=pl.BlockSpec((block_b * Q, O_pad), lambda b: (b, 0)),
            ),
            compiler_params=pltpu.CompilerParams(
                dimension_semantics=sem,
                vmem_limit_bytes=32 * 1024 * 1024,
            ),
        )

    args = (x, query, wkv, bkv, wq, bq, w1, b1, w2, b2)
    try:
        out2d = jax.block_until_ready(build(True, semantics)(*args))
    except Exception:
        # Conservative fallback if this toolchain rejects Buffered(1)/CORE_PARALLEL.
        fallback_sem = ("parallel",) if grid_b >= 2 else ("arbitrary",)
        out2d = jax.block_until_ready(build(False, fallback_sem)(*args))

    # Strip output-lane padding and restore (B, Q, O); layout plumbing only.
    return out2d[:, :O].reshape(B, Q, O)


# ----------------------------------------------------------------------------- reference
def reference_forward(x, query, prepared):
    """Pure-JAX reference mirroring the PyTorch forward (atten_mode='temporal'),
    with the same bf16-matmul / f32-accumulate precision as the kernel."""
    f32 = jnp.float32
    wkv, bkv = prepared["wkv"], prepared["bkv"]
    wq, bq = prepared["wq"], prepared["bq"]
    w1, b1 = prepared["w1"], prepared["b1"]
    w2, b2 = prepared["w2"], prepared["b2"]
    H, O = prepared["H"], prepared["O"]
    cd = wkv.dtype
    xc, qc = x.astype(cd), query.astype(cd)
    xkv = jnp.einsum("bsf,fh->bsh", xc, wkv, preferred_element_type=f32) + bkv
    x_value = xkv[..., :H]
    x_key = xkv[..., H:]
    x_query = jnp.einsum("bqd,dh->bqh", qc, wq, preferred_element_type=f32) + bq
    score = jnp.einsum("bqh,bkh->bqk", x_query.astype(cd), x_key.astype(cd),
                       preferred_element_type=f32)
    attn = jax.nn.softmax(score, axis=-1)
    context = jnp.einsum("bqk,bkh->bqh", attn.astype(cd), x_value.astype(cd),
                         preferred_element_type=f32)
    h = jax.nn.relu(jnp.einsum("bqh,hk->bqk", context.astype(cd), w1,
                               preferred_element_type=f32) + b1)
    out = jnp.einsum("bqk,ko->bqo", h.astype(cd), w2,
                     preferred_element_type=f32) + b2
    return out[..., :O]


# ----------------------------------------------------------------------------- main
if __name__ == "__main__":
    # Small shapes consistent with the module's forward.
    B, S = 2, 16                 # batch, seq_len
    in_features = 8
    query_dim = 8
    num_hidden_units = 32
    out_features = 8
    Q = 8                        # query length (the bmm in attention takes a 3-D query)

    key = jax.random.PRNGKey(0)
    kx, kq, kp = jax.random.split(key, 3)
    x = jax.random.normal(kx, (B, S, in_features), jnp.float32)
    query = jax.random.normal(kq, (B, Q, query_dim), jnp.float32)

    params = init_params(kp, in_features, query_dim, num_hidden_units, out_features)
    prepared = prepare_params(params)            # one-time prep, reused across calls

    out = attention_encoder(x, query, prepared)
    out = jax.block_until_ready(out)

    ref = reference_forward(x, query, prepared)
    assert out.shape == (B, Q, out_features)
    # Tolerance: intentional deviation from the f32 PyTorch reference — bf16 MXU
    # matmuls (f32 accumulation) + EUP approximate reciprocal in the softmax denom.
    assert jnp.allclose(out, ref, atol=5e-3, rtol=5e-3), "Pallas kernel mismatch vs reference"

    # TODO(synk): atten_mode='feature' (input permute) and the optional attention
    # mask are not exercised here; this kernel implements the 'temporal', mask=None path.
    print("KERNEL_OK")
</pallas_src>

<mosaic_0001>
module attributes {stable_mosaic.version = 11 : i64} {
  func.func @attention_encoder_kernel(%arg0: i32, %arg1: memref<2x16x8xf32, #tpu.memory_space<vmem>>, %arg2: memref<2x8x8xf32, #tpu.memory_space<vmem>>, %arg3: memref<8x64xbf16, #tpu.memory_space<vmem>>, %arg4: memref<1x64xf32, #tpu.memory_space<vmem>>, %arg5: memref<8x32xbf16, #tpu.memory_space<vmem>>, %arg6: memref<1x32xf32, #tpu.memory_space<vmem>>, %arg7: memref<32x32xbf16, #tpu.memory_space<vmem>>, %arg8: memref<1x32xf32, #tpu.memory_space<vmem>>, %arg9: memref<32x128xbf16, #tpu.memory_space<vmem>>, %arg10: memref<1x128xf32, #tpu.memory_space<vmem>>, %arg11: memref<16x128xf32, #tpu.memory_space<vmem>>) attributes {dimension_semantics = [#tpu.dimension_semantics<arbitrary>], iteration_bounds = array<i64: 1>, scalar_prefetch = 0 : i64, scratch_operands = 0 : i64, tpu.core_type = #tpu.core_type<tc>, window_params = [{transform_indices = @transform_0, window_bounds = array<i64: 2, 16, 8>}, {transform_indices = @transform_1, window_bounds = array<i64: 2, 8, 8>}, {pipeline_mode = #tpu.pipeline_mode<synchronous>, transform_indices = @transform_2, window_bounds = array<i64: 8, 64>}, {pipeline_mode = #tpu.pipeline_mode<synchronous>, transform_indices = @transform_3, window_bounds = array<i64: 1, 64>}, {pipeline_mode = #tpu.pipeline_mode<synchronous>, transform_indices = @transform_4, window_bounds = array<i64: 8, 32>}, {pipeline_mode = #tpu.pipeline_mode<synchronous>, transform_indices = @transform_5, window_bounds = array<i64: 1, 32>}, {pipeline_mode = #tpu.pipeline_mode<synchronous>, transform_indices = @transform_6, window_bounds = array<i64: 32, 32>}, {pipeline_mode = #tpu.pipeline_mode<synchronous>, transform_indices = @transform_7, window_bounds = array<i64: 1, 32>}, {pipeline_mode = #tpu.pipeline_mode<synchronous>, transform_indices = @transform_8, window_bounds = array<i64: 32, 128>}, {pipeline_mode = #tpu.pipeline_mode<synchronous>, transform_indices = @transform_9, window_bounds = array<i64: 1, 128>}, {transform_indices = @transform_10, window_bounds = array<i64: 16, 128>}]} {
    %c0 = arith.constant 0 : index
    %c0_0 = arith.constant 0 : index
    %c0_1 = arith.constant 0 : index
    %0 = vector.load %arg1[%c0, %c0_0, %c0_1] : memref<2x16x8xf32, #tpu.memory_space<vmem>>, vector<2x16x8xf32>
    %1 = vector.shape_cast %0 : vector<2x16x8xf32> to vector<32x8xf32>
    %2 = arith.truncf %1 : vector<32x8xf32> to vector<32x8xbf16>
    %c0_2 = arith.constant 0 : index
    %c0_3 = arith.constant 0 : index
    %c0_4 = arith.constant 0 : index
    %3 = vector.load %arg2[%c0_2, %c0_3, %c0_4] : memref<2x8x8xf32, #tpu.memory_space<vmem>>, vector<2x8x8xf32>
    %4 = vector.shape_cast %3 : vector<2x8x8xf32> to vector<16x8xf32>
    %5 = arith.truncf %4 : vector<16x8xf32> to vector<16x8xbf16>
    %c0_5 = arith.constant 0 : index
    %c0_6 = arith.constant 0 : index
    %6 = vector.load %arg3[%c0_5, %c0_6] : memref<8x64xbf16, #tpu.memory_space<vmem>>, vector<8x64xbf16>
    %cst = arith.constant dense<0.000000e+00> : vector<32x64xf32>
    %7 = tpu.matmul %2, %6, %cst {dimension_numbers = #tpu.dot_dimension_numbers<[1], [0], [0], [1], [0, 0, 1, 1], [], []>} : vector<32x8xbf16>, vector<8x64xbf16>, vector<32x64xf32> -> vector<32x64xf32>
    %c0_7 = arith.constant 0 : index
    %c0_8 = arith.constant 0 : index
    %8 = vector.load %arg4[%c0_7, %c0_8] : memref<1x64xf32, #tpu.memory_space<vmem>>, vector<1x64xf32>
    %9 = vector.broadcast %8 : vector<1x64xf32> to vector<32x64xf32>
    %10 = arith.addf %7, %9 : vector<32x64xf32>
    %11 = vector.extract_strided_slice %10 {offsets = [0, 0], sizes = [32, 32], strides = [1, 1]} : vector<32x64xf32> to vector<32x32xf32>
    %12 = vector.shape_cast %11 : vector<32x32xf32> to vector<2x16x32xf32>
    %13 = vector.extract_strided_slice %10 {offsets = [0, 32], sizes = [32, 32], strides = [1, 1]} : vector<32x64xf32> to vector<32x32xf32>
    %14 = vector.shape_cast %13 : vector<32x32xf32> to vector<2x16x32xf32>
    %c0_9 = arith.constant 0 : index
    %c0_10 = arith.constant 0 : index
    %15 = vector.load %arg5[%c0_9, %c0_10] : memref<8x32xbf16, #tpu.memory_space<vmem>>, vector<8x32xbf16>
    %cst_11 = arith.constant dense<0.000000e+00> : vector<16x32xf32>
    %16 = tpu.matmul %5, %15, %cst_11 {dimension_numbers = #tpu.dot_dimension_numbers<[1], [0], [0], [1], [0, 0, 1, 1], [], []>} : vector<16x8xbf16>, vector<8x32xbf16>, vector<16x32xf32> -> vector<16x32xf32>
    %c0_12 = arith.constant 0 : index
    %c0_13 = arith.constant 0 : index
    %17 = vector.load %arg6[%c0_12, %c0_13] : memref<1x32xf32, #tpu.memory_space<vmem>>, vector<1x32xf32>
    %18 = vector.broadcast %17 : vector<1x32xf32> to vector<16x32xf32>
    %19 = arith.addf %16, %18 : vector<16x32xf32>
    %20 = vector.shape_cast %19 : vector<16x32xf32> to vector<2x8x32xf32>
    %21 = arith.truncf %20 : vector<2x8x32xf32> to vector<2x8x32xbf16>
    %22 = arith.truncf %14 : vector<2x16x32xf32> to vector<2x16x32xbf16>
    "tpu.trace_start"() <{level = 10 : i32, message = "bqh,bkh->bqk"}> : () -> ()
    %cst_14 = arith.constant dense<0.000000e+00> : vector<2x8x16xf32>
    %23 = tpu.matmul %21, %22, %cst_14 {dimension_numbers = #tpu.dot_dimension_numbers<[2], [2], [1], [1], [0, 0, 0, 1, 1, 1], [0], [0]>} : vector<2x8x32xbf16>, vector<2x16x32xbf16>, vector<2x8x16xf32> -> vector<2x8x16xf32>
    "tpu.trace_stop"() : () -> ()
    %cst_15 = arith.constant dense<0xFF800000> : vector<2x8xf32>
    %24 = vector.multi_reduction <maximumf>, %23, %cst_15 [2] : vector<2x8x16xf32> to vector<2x8xf32>
    %25 = vector.shape_cast %24 : vector<2x8xf32> to vector<2x8x1xf32>
    %26 = vector.broadcast %25 : vector<2x8x1xf32> to vector<2x8x16xf32>
    %27 = arith.subf %23, %26 : vector<2x8x16xf32>
    %28 = math.exp %27 : vector<2x8x16xf32>
    %cst_16 = arith.constant dense<0.000000e+00> : vector<2x8xf32>
    %29 = vector.multi_reduction <add>, %28, %cst_16 [2] : vector<2x8x16xf32> to vector<2x8xf32>
    %30 = vector.shape_cast %29 : vector<2x8xf32> to vector<2x8x1xf32>
    %31 = tpu.reciprocal %30 {approx = true} : vector<2x8x1xf32> -> vector<2x8x1xf32>
    %32 = vector.broadcast %31 : vector<2x8x1xf32> to vector<2x8x16xf32>
    %33 = arith.mulf %28, %32 : vector<2x8x16xf32>
    %34 = arith.truncf %33 : vector<2x8x16xf32> to vector<2x8x16xbf16>
    %35 = arith.truncf %12 : vector<2x16x32xf32> to vector<2x16x32xbf16>
    "tpu.trace_start"() <{level = 10 : i32, message = "bqk,bkh->bqh"}> : () -> ()
    %cst_17 = arith.constant dense<0.000000e+00> : vector<2x8x32xf32>
    %36 = tpu.matmul %34, %35, %cst_17 {dimension_numbers = #tpu.dot_dimension_numbers<[2], [1], [1], [2], [0, 0, 0, 1, 1, 2], [0], [0]>} : vector<2x8x16xbf16>, vector<2x16x32xbf16>, vector<2x8x32xf32> -> vector<2x8x32xf32>
    "tpu.trace_stop"() : () -> ()
    %37 = vector.shape_cast %36 : vector<2x8x32xf32> to vector<16x32xf32>
    %38 = arith.truncf %37 : vector<16x32xf32> to vector<16x32xbf16>
    %c0_18 = arith.constant 0 : index
    %c0_19 = arith.constant 0 : index
    %39 = vector.load %arg7[%c0_18, %c0_19] : memref<32x32xbf16, #tpu.memory_space<vmem>>, vector<32x32xbf16>
    %cst_20 = arith.constant dense<0.000000e+00> : vector<16x32xf32>
    %40 = tpu.matmul %38, %39, %cst_20 {dimension_numbers = #tpu.dot_dimension_numbers<[1], [0], [0], [1], [0, 0, 1, 1], [], []>} : vector<16x32xbf16>, vector<32x32xbf16>, vector<16x32xf32> -> vector<16x32xf32>
    %c0_21 = arith.constant 0 : index
    %c0_22 = arith.constant 0 : index
    %41 = vector.load %arg8[%c0_21, %c0_22] : memref<1x32xf32, #tpu.memory_space<vmem>>, vector<1x32xf32>
    %42 = vector.broadcast %41 : vector<1x32xf32> to vector<16x32xf32>
    %43 = arith.addf %40, %42 : vector<16x32xf32>
    %cst_23 = arith.constant 0.000000e+00 : f32
    %44 = vector.broadcast %cst_23 : f32 to vector<16x32xf32>
    %45 = arith.maximumf %43, %44 : vector<16x32xf32>
    %46 = arith.truncf %45 : vector<16x32xf32> to vector<16x32xbf16>
    %c0_24 = arith.constant 0 : index
    %c0_25 = arith.constant 0 : index
    %47 = vector.load %arg9[%c0_24, %c0_25] : memref<32x128xbf16, #tpu.memory_space<vmem>>, vector<32x128xbf16>
    %cst_26 = arith.constant dense<0.000000e+00> : vector<16x128xf32>
    %48 = tpu.matmul %46, %47, %cst_26 {dimension_numbers = #tpu.dot_dimension_numbers<[1], [0], [0], [1], [0, 0, 1, 1], [], []>} : vector<16x32xbf16>, vector<32x128xbf16>, vector<16x128xf32> -> vector<16x128xf32>
    %c0_27 = arith.constant 0 : index
    %c0_28 = arith.constant 0 : index
    %49 = vector.load %arg10[%c0_27, %c0_28] : memref<1x128xf32, #tpu.memory_space<vmem>>, vector<1x128xf32>
    %50 = vector.broadcast %49 : vector<1x128xf32> to vector<16x128xf32>
    %51 = arith.addf %48, %50 : vector<16x128xf32>
    %c0_29 = arith.constant 0 : index
    %c0_30 = arith.constant 0 : index
    %52 = vector.load %arg11[%c0_29, %c0_30] : memref<16x128xf32, #tpu.memory_space<vmem>>, vector<16x128xf32>
    tpu.vector_store %arg11[%c0_29, %c0_30], %51 {strides = array<i32>} : memref<16x128xf32, #tpu.memory_space<vmem>>, vector<16x128xf32>,
    return
  }
  func.func @transform_0(%arg0: i32) -> (i32, i32, i32) {
    %c0_i32 = arith.constant 0 : i32
    %c0_i32_0 = arith.constant 0 : i32
    %c0_i32_1 = arith.constant 0 : i32
    return %arg0, %c0_i32, %c0_i32_0 : i32, i32, i32
  }
  func.func @transform_1(%arg0: i32) -> (i32, i32, i32) {
    %c0_i32 = arith.constant 0 : i32
    %c0_i32_0 = arith.constant 0 : i32
    %c0_i32_1 = arith.constant 0 : i32
    return %arg0, %c0_i32, %c0_i32_0 : i32, i32, i32
  }
  func.func @transform_2(%arg0: i32) -> (i32, i32) {
    %c0_i32 = arith.constant 0 : i32
    %c0_i32_0 = arith.constant 0 : i32
    %c0_i32_1 = arith.constant 0 : i32
    return %c0_i32, %c0_i32_0 : i32, i32
  }
  func.func @transform_3(%arg0: i32) -> (i32, i32) {
    %c0_i32 = arith.constant 0 : i32
    %c0_i32_0 = arith.constant 0 : i32
    %c0_i32_1 = arith.constant 0 : i32
    return %c0_i32, %c0_i32_0 : i32, i32
  }
  func.func @transform_4(%arg0: i32) -> (i32, i32) {
    %c0_i32 = arith.constant 0 : i32
    %c0_i32_0 = arith.constant 0 : i32
    %c0_i32_1 = arith.constant 0 : i32
    return %c0_i32, %c0_i32_0 : i32, i32
  }
  func.func @transform_5(%arg0: i32) -> (i32, i32) {
    %c0_i32 = arith.constant 0 : i32
    %c0_i32_0 = arith.constant 0 : i32
    %c0_i32_1 = arith.constant 0 : i32
    return %c0_i32, %c0_i32_0 : i32, i32
  }
  func.func @transform_6(%arg0: i32) -> (i32, i32) {
    %c0_i32 = arith.constant 0 : i32
    %c0_i32_0 = arith.constant 0 : i32
    %c0_i32_1 = arith.constant 0 : i32
    return %c0_i32, %c0_i32_0 : i32, i32
  }
  func.func @transform_7(%arg0: i32) -> (i32, i32) {
    %c0_i32 = arith.constant 0 : i32
    %c0_i32_0 = arith.constant 0 : i32
    %c0_i32_1 = arith.constant 0 : i32
    return %c0_i32, %c0_i32_0 : i32, i32
  }
  func.func @transform_8(%arg0: i32) -> (i32, i32) {
    %c0_i32 = arith.constant 0 : i32
    %c0_i32_0 = arith.constant 0 : i32
    %c0_i32_1 = arith.constant 0 : i32
    return %c0_i32, %c0_i32_0 : i32, i32
  }
  func.func @transform_9(%arg0: i32) -> (i32, i32) {
    %c0_i32 = arith.constant 0 : i32
    %c0_i32_0 = arith.constant 0 : i32
    %c0_i32_1 = arith.constant 0 : i32
    return %c0_i32, %c0_i32_0 : i32, i32
  }
  func.func @transform_10(%arg0: i32) -> (i32, i32) {
    %c0_i32 = arith.constant 0 : i32
    %c0_i32_0 = arith.constant 0 : i32
    return %arg0, %c0_i32 : i32, i32
  }
}

module attributes {stable_mosaic.version = 11 : i64} {
  func.func @attention_encoder_kernel(%arg0: i32, %arg1: memref<2x16x8xf32, #tpu.memory_space<vmem>>, %arg2: memref<2x8x8xf32, #tpu.memory_space<vmem>>, %arg3: memref<8x64xbf16, #tpu.memory_space<vmem>>, %arg4: memref<1x64xf32, #tpu.memory_space<vmem>>, %arg5: memref<8x32xbf16, #tpu.memory_space<vmem>>, %arg6: memref<1x32xf32, #tpu.memory_space<vmem>>, %arg7: memref<32x32xbf16, #tpu.memory_space<vmem>>, %arg8: memref<1x32xf32, #tpu.memory_space<vmem>>, %arg9: memref<32x128xbf16, #tpu.memory_space<vmem>>, %arg10: memref<1x128xf32, #tpu.memory_space<vmem>>, %arg11: memref<16x128xf32, #tpu.memory_space<vmem>>) attributes {dimension_semantics = [#tpu.dimension_semantics<arbitrary>], iteration_bounds = array<i64: 1>, scalar_prefetch = 0 : i64, scratch_operands = 0 : i64, tpu.core_type = #tpu.core_type<tc>, window_params = [{transform_indices = @transform_0, window_bounds = array<i64: 2, 16, 8>}, {transform_indices = @transform_1, window_bounds = array<i64: 2, 8, 8>}, {pipeline_mode = #tpu.pipeline_mode<synchronous>, transform_indices = @transform_2, window_bounds = array<i64: 8, 64>}, {pipeline_mode = #tpu.pipeline_mode<synchronous>, transform_indices = @transform_3, window_bounds = array<i64: 1, 64>}, {pipeline_mode = #tpu.pipeline_mode<synchronous>, transform_indices = @transform_4, window_bounds = array<i64: 8, 32>}, {pipeline_mode = #tpu.pipeline_mode<synchronous>, transform_indices = @transform_5, window_bounds = array<i64: 1, 32>}, {pipeline_mode = #tpu.pipeline_mode<synchronous>, transform_indices = @transform_6, window_bounds = array<i64: 32, 32>}, {pipeline_mode = #tpu.pipeline_mode<synchronous>, transform_indices = @transform_7, window_bounds = array<i64: 1, 32>}, {pipeline_mode = #tpu.pipeline_mode<synchronous>, transform_indices = @transform_8, window_bounds = array<i64: 32, 128>}, {pipeline_mode = #tpu.pipeline_mode<synchronous>, transform_indices = @transform_9, window_bounds = array<i64: 1, 128>}, {transform_indices = @transform_10, window_bounds = array<i64: 16, 128>}]} {
    %c0 = arith.constant 0 : index
    %c0_0 = arith.constant 0 : index
    %c0_1 = arith.constant 0 : index
    %0 = vector.load %arg1[%c0, %c0_0, %c0_1] : memref<2x16x8xf32, #tpu.memory_space<vmem>>, vector<2x16x8xf32>
    %1 = vector.shape_cast %0 : vector<2x16x8xf32> to vector<32x8xf32>
    %2 = arith.truncf %1 : vector<32x8xf32> to vector<32x8xbf16>
    %c0_2 = arith.constant 0 : index
    %c0_3 = arith.constant 0 : index
    %c0_4 = arith.constant 0 : index
    %3 = vector.load %arg2[%c0_2, %c0_3, %c0_4] : memref<2x8x8xf32, #tpu.memory_space<vmem>>, vector<2x8x8xf32>
    %4 = vector.shape_cast %3 : vector<2x8x8xf32> to vector<16x8xf32>
    %5 = arith.truncf %4 : vector<16x8xf32> to vector<16x8xbf16>
    %c0_5 = arith.constant 0 : index
    %c0_6 = arith.constant 0 : index
    %6 = vector.load %arg3[%c0_5, %c0_6] : memref<8x64xbf16, #tpu.memory_space<vmem>>, vector<8x64xbf16>
    %cst = arith.constant dense<0.000000e+00> : vector<32x64xf32>
    %7 = tpu.matmul %2, %6, %cst {dimension_numbers = #tpu.dot_dimension_numbers<[1], [0], [0], [1], [0, 0, 1, 1], [], []>} : vector<32x8xbf16>, vector<8x64xbf16>, vector<32x64xf32> -> vector<32x64xf32>
    %c0_7 = arith.constant 0 : index
    %c0_8 = arith.constant 0 : index
    %8 = vector.load %arg4[%c0_7, %c0_8] : memref<1x64xf32, #tpu.memory_space<vmem>>, vector<1x64xf32>
    %9 = vector.broadcast %8 : vector<1x64xf32> to vector<32x64xf32>
    %10 = arith.addf %7, %9 : vector<32x64xf32>
    %11 = vector.extract_strided_slice %10 {offsets = [0, 0], sizes = [32, 32], strides = [1, 1]} : vector<32x64xf32> to vector<32x32xf32>
    %12 = vector.shape_cast %11 : vector<32x32xf32> to vector<2x16x32xf32>
    %13 = vector.extract_strided_slice %10 {offsets = [0, 32], sizes = [32, 32], strides = [1, 1]} : vector<32x64xf32> to vector<32x32xf32>
    %14 = vector.shape_cast %13 : vector<32x32xf32> to vector<2x16x32xf32>
    %c0_9 = arith.constant 0 : index
    %c0_10 = arith.constant 0 : index
    %15 = vector.load %arg5[%c0_9, %c0_10] : memref<8x32xbf16, #tpu.memory_space<vmem>>, vector<8x32xbf16>
    %cst_11 = arith.constant dense<0.000000e+00> : vector<16x32xf32>
    %16 = tpu.matmul %5, %15, %cst_11 {dimension_numbers = #tpu.dot_dimension_numbers<[1], [0], [0], [1], [0, 0, 1, 1], [], []>} : vector<16x8xbf16>, vector<8x32xbf16>, vector<16x32xf32> -> vector<16x32xf32>
    %c0_12 = arith.constant 0 : index
    %c0_13 = arith.constant 0 : index
    %17 = vector.load %arg6[%c0_12, %c0_13] : memref<1x32xf32, #tpu.memory_space<vmem>>, vector<1x32xf32>
    %18 = vector.broadcast %17 : vector<1x32xf32> to vector<16x32xf32>
    %19 = arith.addf %16, %18 : vector<16x32xf32>
    %20 = vector.shape_cast %19 : vector<16x32xf32> to vector<2x8x32xf32>
    %21 = arith.truncf %20 : vector<2x8x32xf32> to vector<2x8x32xbf16>
    %22 = arith.truncf %14 : vector<2x16x32xf32> to vector<2x16x32xbf16>
    "tpu.trace_start"() <{level = 10 : i32, message = "bqh,bkh->bqk"}> : () -> ()
    %cst_14 = arith.constant dense<0.000000e+00> : vector<2x8x16xf32>
    %23 = tpu.matmul %21, %22, %cst_14 {dimension_numbers = #tpu.dot_dimension_numbers<[2], [2], [1], [1], [0, 0, 0, 1, 1, 1], [0], [0]>} : vector<2x8x32xbf16>, vector<2x16x32xbf16>, vector<2x8x16xf32> -> vector<2x8x16xf32>
    "tpu.trace_stop"() : () -> ()
    %cst_15 = arith.constant dense<0xFF800000> : vector<2x8xf32>
    %24 = vector.multi_reduction <maximumf>, %23, %cst_15 [2] : vector<2x8x16xf32> to vector<2x8xf32>
    %25 = vector.shape_cast %24 : vector<2x8xf32> to vector<2x8x1xf32>
    %26 = vector.broadcast %25 : vector<2x8x1xf32> to vector<2x8x16xf32>
    %27 = arith.subf %23, %26 : vector<2x8x16xf32>
    %28 = math.exp %27 : vector<2x8x16xf32>
    %cst_16 = arith.constant dense<0.000000e+00> : vector<2x8xf32>
    %29 = vector.multi_reduction <add>, %28, %cst_16 [2] : vector<2x8x16xf32> to vector<2x8xf32>
    %30 = vector.shape_cast %29 : vector<2x8xf32> to vector<2x8x1xf32>
    %31 = tpu.reciprocal %30 {approx = true} : vector<2x8x1xf32> -> vector<2x8x1xf32>
    %32 = vector.broadcast %31 : vector<2x8x1xf32> to vector<2x8x16xf32>
    %33 = arith.mulf %28, %32 : vector<2x8x16xf32>
    %34 = arith.truncf %33 : vector<2x8x16xf32> to vector<2x8x16xbf16>
    %35 = arith.truncf %12 : vector<2x16x32xf32> to vector<2x16x32xbf16>
    "tpu.trace_start"() <{level = 10 : i32, message = "bqk,bkh->bqh"}> : () -> ()
    %cst_17 = arith.constant dense<0.000000e+00> : vector<2x8x32xf32>
    %36 = tpu.matmul %34, %35, %cst_17 {dimension_numbers = #tpu.dot_dimension_numbers<[2], [1], [1], [2], [0, 0, 0, 1, 1, 2], [0], [0]>} : vector<2x8x16xbf16>, vector<2x16x32xbf16>, vector<2x8x32xf32> -> vector<2x8x32xf32>
    "tpu.trace_stop"() : () -> ()
    %37 = vector.shape_cast %36 : vector<2x8x32xf32> to vector<16x32xf32>
    %38 = arith.truncf %37 : vector<16x32xf32> to vector<16x32xbf16>
    %c0_18 = arith.constant 0 : index
    %c0_19 = arith.constant 0 : index
    %39 = vector.load %arg7[%c0_18, %c0_19] : memref<32x32xbf16, #tpu.memory_space<vmem>>, vector<32x32xbf16>
    %cst_20 = arith.constant dense<0.000000e+00> : vector<16x32xf32>
    %40 = tpu.matmul %38, %39, %cst_20 {dimension_numbers = #tpu.dot_dimension_numbers<[1], [0], [0], [1], [0, 0, 1, 1], [], []>} : vector<16x32xbf16>, vector<32x32xbf16>, vector<16x32xf32> -> vector<16x32xf32>
    %c0_21 = arith.constant 0 : index
    %c0_22 = arith.constant 0 : index
    %41 = vector.load %arg8[%c0_21, %c0_22] : memref<1x32xf32, #tpu.memory_space<vmem>>, vector<1x32xf32>
    %42 = vector.broadcast %41 : vector<1x32xf32> to vector<16x32xf32>
    %43 = arith.addf %40, %42 : vector<16x32xf32>
    %cst_23 = arith.constant 0.000000e+00 : f32
    %44 = vector.broadcast %cst_23 : f32 to vector<16x32xf32>
    %45 = arith.maximumf %43, %44 : vector<16x32xf32>
    %46 = arith.truncf %45 : vector<16x32xf32> to vector<16x32xbf16>
    %c0_24 = arith.constant 0 : index
    %c0_25 = arith.constant 0 : index
    %47 = vector.load %arg9[%c0_24, %c0_25] : memref<32x128xbf16, #tpu.memory_space<vmem>>, vector<32x128xbf16>
    %cst_26 = arith.constant dense<0.000000e+00> : vector<16x128xf32>
    %48 = tpu.matmul %46, %47, %cst_26 {dimension_numbers = #tpu.dot_dimension_numbers<[1], [0], [0], [1], [0, 0, 1, 1], [], []>} : vector<16x32xbf16>, vector<32x128xbf16>, vector<16x128xf32> -> vector<16x128xf32>
    %c0_27 = arith.constant 0 : index
    %c0_28 = arith.constant 0 : index
    %49 = vector.load %arg10[%c0_27, %c0_28] : memref<1x128xf32, #tpu.memory_space<vmem>>, vector<1x128xf32>
    %50 = vector.broadcast %49 : vector<1x128xf32> to vector<16x128xf32>
    %51 = arith.addf %48, %50 : vector<16x128xf32>
    %c0_29 = arith.constant 0 : index
    %c0_30 = arith.constant 0 : index
    %52 = vector.load %arg11[%c0_29, %c0_30] : memref<16x128xf32, #tpu.memory_space<vmem>>, vector<16x128xf32>
    tpu.vector_store %arg11[%c0_29, %c0_30], %51 {strides = array<i32>} : memref<16x128xf32, #tpu.memory_space<vmem>>, vector<16x128xf32>,
    return
  }
  func.func @transform_0(%arg0: i32) -> (i32, i32, i32) {
    %c0_i32 = arith.constant 0 : i32
    %c0_i32_0 = arith.constant 0 : i32
    %c0_i32_1 = arith.constant 0 : i32
    return %arg0, %c0_i32, %c0_i32_0 : i32, i32, i32
  }
  func.func @transform_1(%arg0: i32) -> (i32, i32, i32) {
    %c0_i32 = arith.constant 0 : i32
    %c0_i32_0 = arith.constant 0 : i32
    %c0_i32_1 = arith.constant 0 : i32
    return %arg0, %c0_i32, %c0_i32_0 : i32, i32, i32
  }
  func.func @transform_2(%arg0: i32) -> (i32, i32) {
    %c0_i32 = arith.constant 0 : i32
    %c0_i32_0 = arith.constant 0 : i32
    %c0_i32_1 = arith.constant 0 : i32
    return %c0_i32, %c0_i32_0 : i32, i32
  }
  func.func @transform_3(%arg0: i32) -> (i32, i32) {
    %c0_i32 = arith.constant 0 : i32
    %c0_i32_0 = arith.constant 0 : i32
    %c0_i32_1 = arith.constant 0 : i32
    return %c0_i32, %c0_i32_0 : i32, i32
  }
  func.func @transform_4(%arg0: i32) -> (i32, i32) {
    %c0_i32 = arith.constant 0 : i32
    %c0_i32_0 = arith.constant 0 : i32
    %c0_i32_1 = arith.constant 0 : i32
    return %c0_i32, %c0_i32_0 : i32, i32
  }
  func.func @transform_5(%arg0: i32) -> (i32, i32) {
    %c0_i32 = arith.constant 0 : i32
    %c0_i32_0 = arith.constant 0 : i32
    %c0_i32_1 = arith.constant 0 : i32
    return %c0_i32, %c0_i32_0 : i32, i32
  }
  func.func @transform_6(%arg0: i32) -> (i32, i32) {
    %c0_i32 = arith.constant 0 : i32
    %c0_i32_0 = arith.constant 0 : i32
    %c0_i32_1 = arith.constant 0 : i32
    return %c0_i32, %c0_i32_0 : i32, i32
  }
  func.func @transform_7(%arg0: i32) -> (i32, i32) {
    %c0_i32 = arith.constant 0 : i32
    %c0_i32_0 = arith.constant 0 : i32
    %c0_i32_1 = arith.constant 0 : i32
    return %c0_i32, %c0_i32_0 : i32, i32
  }
  func.func @transform_8(%arg0: i32) -> (i32, i32) {
    %c0_i32 = arith.constant 0 : i32
    %c0_i32_0 = arith.constant 0 : i32
    %c0_i32_1 = arith.constant 0 : i32
    return %c0_i32, %c0_i32_0 : i32, i32
  }
  func.func @transform_9(%arg0: i32) -> (i32, i32) {
    %c0_i32 = arith.constant 0 : i32
    %c0_i32_0 = arith.constant 0 : i32
    %c0_i32_1 = arith.constant 0 : i32
    return %c0_i32, %c0_i32_0 : i32, i32
  }
  func.func @transform_10(%arg0: i32) -> (i32, i32) {
    %c0_i32 = arith.constant 0 : i32
    %c0_i32_0 = arith.constant 0 : i32
    return %arg0, %c0_i32 : i32, i32
  }
}

</mosaic_0001>

<bundles_post_ra>
// kernel: tpu_custom_call.1
= control target key start
LH: loop header
LB: loop body
LE: loop exit
PB: predicated region body
PF: predicated region fallthrough
CT: control target
= control target key end

     0   :  { %vm61_vm0 = vcmask 1043456   ;;  %vm54_vm1 = vcmask 64512   ;;  %v670_v9 = vmov 0.0   ;;  %vm671_vm2 = vmmov 0   ;;  %s829_s0 = inlined_call_operand.vmem [shape: f32[2,16,8], index: 0, kind: input, shape index: {}]   ;;  %s830_s1 = inlined_call_operand.vmem [shape: f32[2,8,8], index: 1, kind: input, shape index: {}]   ;;  %s831_s2 = inlined_call_operand.vmem [shape: bf16[8,64], index: 2, kind: input, shape index: {}]   ;;  %s832_s3 = inlined_call_operand.vmem [shape: f32[1,64], index: 3, kind: input, shape index: {}]   ;;  %s833_s4 = inlined_call_operand.vmem [shape: bf16[8,32], index: 4, kind: input, shape index: {}]   ;;  %s834_s5 = inlined_call_operand.vmem [shape: f32[1,32], index: 5, kind: input, shape index: {}]   ;;  %s835_s6 = inlined_call_operand.vmem [shape: bf16[32,32], index: 6, kind: input, shape index: {}]   ;;  %s836_s7 = inlined_call_operand.vmem [shape: f32[1,32], index: 7, kind: input, shape index: {}]   ;;  %s837_s8 = inlined_call_operand.vmem [shape: bf16[32,128], index: 8, kind: input, shape index: {}]   ;;  %s838_s9 = inlined_call_operand.vmem [shape: f32[1,128], index: 9, kind: input, shape index: {}]   ;;  %s839_s10 = inlined_call_operand.hbm [shape: f32[16,128], index: 10, kind: output, shape index: {}]  }
   0x1   :  { %v46_v0 = vld [vmem:[%s831_s2] sm:$0xf]  ;;  %v38_v2 = vld [vmem:[%s829_s0 + $0x8] sm:$0xff]  ;;  %v39_v5 = vld [vmem:[%s829_s0 + $0x10] sm:$0xff]  ;;  %581 = vmatprep.subr.bf16.mxu1 %v670_v9  ;;  %583 = vmatprep.mubr.msk.bf16.mxu1 %vm671_vm2, %v670_v9 }
   0x2   :  { %v37_v1 = vld [vmem:[%s829_s0] sm:$0xff]  ;;  %627 = vmatprep.subr.msk.bf16.mxu0 %vm61_vm0, %v46_v0  ;;  %v63_v3 = vsel %vm61_vm0, %v46_v0, 0  ;;  %v40_v6 = vld [vmem:[%s829_s0 + $0x18] sm:$0xff]  ;;  %v44_v12 = vld [vmem:[%s830_s1 + $0x8] sm:$0xff] }
   0x3   :  { %v41_v4 = vpack.c.bf16 %v38_v2, %v37_v1  ;;  %v114_v7 = vld [vmem:[%s833_s4] sm:$0xf]  ;;  %576 = vmatpush3.bf16.msra.mxu0 %v63_v3  ;;  %v42_v8 = vpack.c.bf16 %v40_v6, %v39_v5 }
   0x4   :  { %v126_v10 = vsel %vm61_vm0, %v114_v7, 0  ;;  %v43_v11 = vld [vmem:[%s830_s1] sm:$0xff]  ;;  %587 = vmatprep.subr.bf16.mxu0 %v670_v9 }
   0x5   :  { %577 = vmatprep.mubr.msk.bf16.mxu0 %vm54_vm1, %v41_v4  ;;  %582 = vmatpush3.bf16.msra.mxu1 %v126_v10  ;;  %v45_v13 = vpack.c.bf16 %v44_v12, %v43_v11 }
   0x6   :  { %578 = vmatmul.mubr.msk.bf16.vlgmr.msra.gmra.mrb[0].mxu0 %vm54_vm1, %v42_v8  ;;  %593 = vmatprep.subr.bf16.mxu1 %v670_v9 }
   0x7   :  { %15 = vsyncpa [#allocation3], 0  ;;  %589 = vmatprep.mubr.msk.bf16.mxu0 %vm671_vm2, %v670_v9  ;;  %v539_v15 = vld [vmem:[%s832_s3] ss:$0 sm:$0xff]  ;;  %s672_s4 = smov 96   ;;  %vm176_vm3 = vcmask 261120  }
   0x8   :  { %584 = vmatmul.mubr.msk.bf16.vlgmr.msra.gmra.mrb[0].mxu1 %vm54_vm1, %v45_v13  ;;  %v542_v29 = vld [vmem:[%s834_s5] ss:$0 sm:$0xff]  ;;  %vm272_vm4 = vcmask 130048   ;;  %v635_v3 = vld [vmem:[%s835_s6 + $0x8] sm:$0xff]  }
   0x9   :  { %595 = vmatprep.mubr.msk.bf16.mxu1 %vm671_vm2, %v670_v9  ;;  %v634_v2 = vld [vmem:[%s835_s6] sm:$0xff]  }
  0xd9   :  { %v579_v14 = vpop.f32.mrb[0].mxu0 }
  0xda   :  { %v99_v16 = vpop.f32.mrb[1].mxu0  ;;  %v108_v20 = vadd.f32 %v579_v14, %v539_v15  ;;  %v636_v14 = vld [vmem:[%s837_s8] sm:$0xff]  }
  0xdb   :  { %v162_v17 = vpop.f32.mrb[0].mxu1  ;;  %v580_v18 = vpop.f32.mrb[2].mxu0  ;;  %v100_v24 = vadd.f32 %v539_v15, %v99_v16  ;;  %v548_v16 = vld [vmem:[%s836_s7] ss:$0 sm:$0xff] }
  0xdc   :  { %v585_v19 = vpop.f32.mrb[1].mxu1  ;;  %v111_v21 = vadd.f32 %v580_v18, %v539_v15  ;;  %v102_v22 = vpop.f32.mrb[3].mxu0  ;;  %v163_v32 = vadd.f32 %v542_v29, %v162_v17 }
  0xdd   :  { %v165_v23 = vpop.f32.mrb[2].mxu1  ;;  %v103_v25 = vadd.f32 %v539_v15, %v102_v22  ;;  %v637_v15 = vld [vmem:[%s837_s8 + $0x8] sm:$0xff]   ;;  %s673_s8 = smov [#allocation2]  }
  0xde   :  { %v586_v26 = vpop.f32.mrb[3].mxu1  ;;  %v172_v27 = vpack.c.bf16 %v111_v21, %v108_v20  ;;  %v169_v34 = vpack.c.bf16 %v163_v32, %v163_v32  ;;  %v166_v36 = vadd.f32 %v542_v29, %v165_v23  ;;  %s528_s19 = sshll.u32 %s673_s8, 4  ;;  %s529_s19 = int_to_ptr.vmem [resolvable:$true] %s528_s19 }
  0xdf   :  { %v171_v28 = vpack.c.bf16 %v103_v25, %v100_v24  ;;  %s646_s7 = scalar_lea.vmem %s529_s19, 256  ;;  %p651_p1 = scmp.lt.s32.totalorder %s529_s19, %s529_s19 }
  0xe0   :  { %v170_v37 = vpack.c.bf16 %v166_v36, %v166_v36  ;;  %p647_p0 = scmp.ne.s32.totalorder %s529_s19, %s646_s7  ;;  %p652_p2 = scmp.lt.s32.totalorder %s646_s7, %s646_s7 }
  0xe1   :  { %174 = vrot.lane.b32.xlu0 %v171_v28, %s672_s4 }
  0xe2   :  { %p653_p3 = por %p652_p2, %p651_p1 }
  0xe4   :  { %p654_p4 = pnand %p653_p3, %p647_p0 }
  0xe5   :  { %224 = vrot.lane.b32.xlu0 %v172_v27, %s672_s4 }
 0x153   :  { %v175_v30 = vpop.permute.xlu0 %174 }
 0x154   :  { %v181_v31 = vsel %vm176_vm3, %v175_v30, 0 }
 0x155   :  { %588 = vmatpush3.bf16.xpose.msra.mxu0 %v181_v31 }
 0x156   :  { %599 = vmatprep.subr.bf16.mxu0 %v670_v9 }
 0x157   :  { %v225_v33 = vpop.permute.xlu0 %224 }
 0x158   :  { %v230_v35 = vsel %vm176_vm3, %v225_v33, 0 }
 0x159   :  { %594 = vmatpush3.bf16.xpose.msra.mxu1 %v230_v35 }
 0x15a   :  { %605 = vmatprep.subr.bf16.mxu1 %v670_v9 }
 0x15c   :  { %590 = vmatmul.mubr.msk.bf16.vlgmr.msra.gmra.mrb[4].mxu0 %vm176_vm3, %v169_v34 }
 0x15d   :  { %600 = vmatpush3.bf16.msra.mxu0 %v171_v28  ;;  %601 = vmatprep.mubr.msk.bf16.mxu0 %vm671_vm2, %v670_v9 }
 0x15e   :  { %611 = vmatprep.subr.bf16.mxu0 %v670_v9 }
 0x160   :  { %596 = vmatmul.mubr.msk.bf16.vlgmr.msra.gmra.mrb[4].mxu1 %vm176_vm3, %v170_v37 }
 0x161   :  { %606 = vmatpush3.bf16.msra.mxu1 %v172_v27  ;;  %607 = vmatprep.mubr.msk.bf16.mxu1 %vm671_vm2, %v670_v9 }
 0x162   :  { %619 = vmatprep.subr.bf16.mxu1 %v670_v9 }
 0x22f   :  { %v217_v38 = vpop.f32.mrb[4].mxu0 }
 0x230   :  { %v591_v39 = vpop.f32.mrb[5].mxu0  ;;  %v273_v40 = vsel %vm272_vm4, %v217_v38, -inf }
 0x231   :  { %274 = vmax.xlane.f32.xlu1 %v273_v40  ;;  %v220_v41 = vpop.f32.mrb[6].mxu0 }
 0x232   :  { %v592_v42 = vpop.f32.mrb[7].mxu0 }
 0x233   :  { %v266_v43 = vpop.f32.mrb[4].mxu1 }
 0x234   :  { %v597_v44 = vpop.f32.mrb[5].mxu1  ;;  %v276_v45 = vsel %vm272_vm4, %v266_v43, -inf }
 0x235   :  { %277 = vmax.xlane.f32.xlu1 %v276_v45  ;;  %v269_v46 = vpop.f32.mrb[6].mxu1 }
 0x236   :  { %v598_v47 = vpop.f32.mrb[7].mxu1 }
 0x2be   :  { %v275_v48 = vpop.xlane.xlu1 %274 }
 0x2bf   :  { %v279_v49 = vsub.f32 %v217_v38, %v275_v48 }
 0x2c1   :  { %v281_v50 = vmul.f32 1.442695, %v279_v49 }
 0x2c2   :  { %v278_v51 = vpop.xlane.xlu1 %277 }
 0x2c3   :  { %638 = vpow2.f32 %v281_v50  ;;  %v280_v52 = vsub.f32 %v266_v43, %v278_v51 }
 0x2c5   :  { %v283_v53 = vmul.f32 1.442695, %v280_v52 }
 0x2c7   :  { %640 = vpow2.f32 %v283_v53 }
 0x2cd   :  { %v639_v54 = vpop.eup %638 }
 0x2ce   :  { %v285_v55 = vsel %vm272_vm4, %v639_v54, 0.0 }
 0x2cf   :  { %286 = vadd.xlane.f32.xlu0 %v285_v55 }
 0x2d1   :  { %v641_v56 = vpop.eup %640 }
 0x2d2   :  { %v288_v57 = vsel %vm272_vm4, %v641_v56, 0.0 }
 0x2d3   :  { %289 = vadd.xlane.f32.xlu1 %v288_v57 }
 0x35c   :  { %v287_v58 = vpop.xlane.xlu0 %286 }
 0x35d   :  { %642 = vrcp.f32 %v287_v58 }
 0x360   :  { %v290_v59 = vpop.xlane.xlu1 %289 }
 0x361   :  { %644 = vrcp.f32 %v290_v59 }
 0x367   :  { %v643_v60 = vpop.eup %642 }
 0x368   :  { %v293_v61 = vmul.f32 %v643_v60, %v639_v54 }
 0x36a   :  { %v295_v62 = vpack.c.bf16 %v293_v61, %v293_v61 }
 0x36b   :  { %v645_v63 = vpop.eup %644 }
 0x36c   :  { %v294_v0 = vmul.f32 %v645_v63, %v641_v56  ;;  %602 = vmatmul.mubr.msk.bf16.vlgmr.msra.gmra.mrb[8].mxu0 %vm272_vm4, %v295_v62 }
 0x36d   :  { %615 = vmatprep.mubr.msk.bf16.mxu0 %vm671_vm2, %v670_v9  ;;  %612 = vmatpush3.bf16.msra.mxu0 %v634_v2 }
 0x36e   :  { %v296_v1 = vpack.c.bf16 %v294_v0, %v294_v0  ;;  %613 = vmatprep.subr.bf16.mxu0 %v670_v9 }
 0x370   :  { %608 = vmatmul.mubr.msk.bf16.vlgmr.msra.gmra.mrb[8].mxu1 %vm272_vm4, %v296_v1 }
 0x371   :  { %623 = vmatprep.mubr.msk.bf16.mxu1 %vm671_vm2, %v670_v9  ;;  %614 = vmatpush3.bf16.msra.mxu0 %v635_v3 }
 0x372   :  { %620 = vmatpush3.bf16.msra.mxu1 %v636_v14 }
 0x373   :  { %621 = vmatprep.subr.bf16.mxu1 %v670_v9  ;;  %v552_v9 = vld [vmem:[%s838_s9] ss:$0 sm:$0xff] }
 0x376   :  { %622 = vmatpush3.bf16.msra.mxu1 %v637_v15 }
 0x43f   :  { %v334_v4 = vpop.f32.mrb[8].mxu0 }
 0x440   :  { %v603_v5 = vpop.f32.mrb[9].mxu0 }
 0x441   :  { %v337_v6 = vpop.f32.mrb[10].mxu0 }
 0x442   :  { %v604_v7 = vpop.f32.mrb[11].mxu0 }
 0x443   :  { %v377_v8 = vpop.f32.mrb[8].mxu1 }
 0x444   :  { %v383_v10 = vpack.c.bf16 %v377_v8, %v334_v4  ;;  %v609_v11 = vpop.f32.mrb[9].mxu1 }
 0x445   :  { %v380_v12 = vpop.f32.mrb[10].mxu1 }
 0x446   :  { %v610_v13 = vpop.f32.mrb[11].mxu1  ;;  %616 = vmatmul.mubr.msk.bf16.vlgmr.msra.gmra.mrb[12].mxu0 %vm176_vm3, %v383_v10 }
 0x519   :  { %v444_v17 = vpop.f32.mrb[12].mxu0 }
 0x51a   :  { %v445_v18 = vadd.f32 %v548_v16, %v444_v17  ;;  %v617_v19 = vpop.f32.mrb[13].mxu0 }
 0x51b   :  { %v447_v20 = vpop.f32.mrb[14].mxu0 }
 0x51c   :  { %v448_v21 = vadd.f32 %v548_v16, %v447_v20  ;;  %v618_v22 = vpop.f32.mrb[15].mxu0  ;;  %v451_v23 = vmax.f32 %v445_v18, 0.0 }
 0x51e   :  { %v452_v24 = vmax.f32 %v448_v21, 0.0 }
 0x520   :  { %v453_v25 = vpack.c.bf16 %v452_v24, %v451_v23 }
 0x522   :  { %624 = vmatmul.mubr.msk.bf16.vlgmr.msra.gmra.mrb[12].mxu1 %vm176_vm3, %v453_v25 }
 0x5f5   :  { %v514_v26 = vpop.f32.mrb[12].mxu1 }
 0x5f6   :  { %v515_v27 = vadd.f32 %v552_v9, %v514_v26  ;;  %v625_v28 = vpop.f32.mrb[13].mxu1 }
 0x5f7   :  { %v517_v29 = vpop.f32.mrb[14].mxu1 }
 0x5f8   :  { %521 = vst [vmem:[#allocation2] sm:$0xff] %v515_v27  ;;  %v518_v30 = vadd.f32 %v552_v9, %v517_v29  ;;  %v626_v31 = vpop.f32.mrb[15].mxu1 }
 0x5fa   :  { %522 = vst [vmem:[#allocation2 + $0x8] sm:$0xff] %v518_v30 }
 0x5fb   :  { %657 = shalt.err (!%p654_p4)
}
 0x5fc   :  { %s658_s21 = scalar_lea.hbm %s839_s10, 256 }
 0x5fd   :  { %p659_p5 = scmp.ne.s32.totalorder %s839_s10, %s658_s21  ;;  %p662_p6 = scmp.lt.u32.totalorder %s658_s21, %s839_s10 }
 0x5ff   :  { %p664_p7 = pnand %p662_p6, %p659_p5 }
 0x601   :  { %667 = shalt.err (!%p664_p7)
}
 0x602   :  { %s674_s25 = smov 128   ;;  %s675_s26 = smov 8  }
 0x603   :  { %534 = dma.vmem_to_hbm [thread:$0]  %s529_s19, 256, %s839_s10, [#allocation3], %s674_s25, %s674_s25, %s675_s26  }
 0x604   :  { %668 = dma.done.wait [#allocation3], 256  }
 0x605   :  { %669 = vsyncadd [#allocation3], 4294967040 }
 0x606   :  { %538 = vsyncpa [#allocation3], 1 }

// kernel: tpu_custom_call.1
= control target key start
LH: loop header
LB: loop body
LE: loop exit
PB: predicated region body
PF: predicated region fallthrough
CT: control target
= control target key end

     0   :  { %vm61_vm0 = vcmask 1043456   ;;  %vm54_vm1 = vcmask 64512   ;;  %v670_v9 = vmov 0.0   ;;  %vm671_vm2 = vmmov 0   ;;  %s829_s0 = inlined_call_operand.vmem [shape: f32[2,16,8], index: 0, kind: input, shape index: {}]   ;;  %s830_s1 = inlined_call_operand.vmem [shape: f32[2,8,8], index: 1, kind: input, shape index: {}]   ;;  %s831_s2 = inlined_call_operand.vmem [shape: bf16[8,64], index: 2, kind: input, shape index: {}]   ;;  %s832_s3 = inlined_call_operand.vmem [shape: f32[1,64], index: 3, kind: input, shape index: {}]   ;;  %s833_s4 = inlined_call_operand.vmem [shape: bf16[8,32], index: 4, kind: input, shape index: {}]   ;;  %s834_s5 = inlined_call_operand.vmem [shape: f32[1,32], index: 5, kind: input, shape index: {}]   ;;  %s835_s6 = inlined_call_operand.vmem [shape: bf16[32,32], index: 6, kind: input, shape index: {}]   ;;  %s836_s7 = inlined_call_operand.vmem [shape: f32[1,32], index: 7, kind: input, shape index: {}]   ;;  %s837_s8 = inlined_call_operand.vmem [shape: bf16[32,128], index: 8, kind: input, shape index: {}]   ;;  %s838_s9 = inlined_call_operand.vmem [shape: f32[1,128], index: 9, kind: input, shape index: {}]   ;;  %s839_s10 = inlined_call_operand.hbm [shape: f32[16,128], index: 10, kind: output, shape index: {}]  }
   0x1   :  { %v46_v0 = vld [vmem:[%s831_s2] sm:$0xf]  ;;  %v38_v2 = vld [vmem:[%s829_s0 + $0x8] sm:$0xff]  ;;  %v39_v5 = vld [vmem:[%s829_s0 + $0x10] sm:$0xff]  ;;  %581 = vmatprep.subr.bf16.mxu1 %v670_v9  ;;  %583 = vmatprep.mubr.msk.bf16.mxu1 %vm671_vm2, %v670_v9 }
   0x2   :  { %v37_v1 = vld [vmem:[%s829_s0] sm:$0xff]  ;;  %627 = vmatprep.subr.msk.bf16.mxu0 %vm61_vm0, %v46_v0  ;;  %v63_v3 = vsel %vm61_vm0, %v46_v0, 0  ;;  %v40_v6 = vld [vmem:[%s829_s0 + $0x18] sm:$0xff]  ;;  %v44_v12 = vld [vmem:[%s830_s1 + $0x8] sm:$0xff] }
   0x3   :  { %v41_v4 = vpack.c.bf16 %v38_v2, %v37_v1  ;;  %v114_v7 = vld [vmem:[%s833_s4] sm:$0xf]  ;;  %576 = vmatpush3.bf16.msra.mxu0 %v63_v3  ;;  %v42_v8 = vpack.c.bf16 %v40_v6, %v39_v5 }
   0x4   :  { %v126_v10 = vsel %vm61_vm0, %v114_v7, 0  ;;  %v43_v11 = vld [vmem:[%s830_s1] sm:$0xff]  ;;  %587 = vmatprep.subr.bf16.mxu0 %v670_v9 }
   0x5   :  { %577 = vmatprep.mubr.msk.bf16.mxu0 %vm54_vm1, %v41_v4  ;;  %582 = vmatpush3.bf16.msra.mxu1 %v126_v10  ;;  %v45_v13 = vpack.c.bf16 %v44_v12, %v43_v11 }
   0x6   :  { %578 = vmatmul.mubr.msk.bf16.vlgmr.msra.gmra.mrb[0].mxu0 %vm54_vm1, %v42_v8  ;;  %593 = vmatprep.subr.bf16.mxu1 %v670_v9 }
   0x7   :  { %15 = vsyncpa [#allocation3], 0  ;;  %589 = vmatprep.mubr.msk.bf16.mxu0 %vm671_vm2, %v670_v9  ;;  %v539_v15 = vld [vmem:[%s832_s3] ss:$0 sm:$0xff]  ;;  %s672_s4 = smov 96   ;;  %vm176_vm3 = vcmask 261120  }
   0x8   :  { %584 = vmatmul.mubr.msk.bf16.vlgmr.msra.gmra.mrb[0].mxu1 %vm54_vm1, %v45_v13  ;;  %v542_v29 = vld [vmem:[%s834_s5] ss:$0 sm:$0xff]  ;;  %vm272_vm4 = vcmask 130048   ;;  %v635_v3 = vld [vmem:[%s835_s6 + $0x8] sm:$0xff]  }
   0x9   :  { %595 = vmatprep.mubr.msk.bf16.mxu1 %vm671_vm2, %v670_v9  ;;  %v634_v2 = vld [vmem:[%s835_s6] sm:$0xff]  }
  0xd9   :  { %v579_v14 = vpop.f32.mrb[0].mxu0 }
  0xda   :  { %v99_v16 = vpop.f32.mrb[1].mxu0  ;;  %v108_v20 = vadd.f32 %v579_v14, %v539_v15  ;;  %v636_v14 = vld [vmem:[%s837_s8] sm:$0xff]  }
  0xdb   :  { %v162_v17 = vpop.f32.mrb[0].mxu1  ;;  %v580_v18 = vpop.f32.mrb[2].mxu0  ;;  %v100_v24 = vadd.f32 %v539_v15, %v99_v16  ;;  %v548_v16 = vld [vmem:[%s836_s7] ss:$0 sm:$0xff] }
  0xdc   :  { %v585_v19 = vpop.f32.mrb[1].mxu1  ;;  %v111_v21 = vadd.f32 %v580_v18, %v539_v15  ;;  %v102_v22 = vpop.f32.mrb[3].mxu0  ;;  %v163_v32 = vadd.f32 %v542_v29, %v162_v17 }
  0xdd   :  { %v165_v23 = vpop.f32.mrb[2].mxu1  ;;  %v103_v25 = vadd.f32 %v539_v15, %v102_v22  ;;  %v637_v15 = vld [vmem:[%s837_s8 + $0x8] sm:$0xff]   ;;  %s673_s8 = smov [#allocation2]  }
  0xde   :  { %v586_v26 = vpop.f32.mrb[3].mxu1  ;;  %v172_v27 = vpack.c.bf16 %v111_v21, %v108_v20  ;;  %v169_v34 = vpack.c.bf16 %v163_v32, %v163_v32  ;;  %v166_v36 = vadd.f32 %v542_v29, %v165_v23  ;;  %s528_s19 = sshll.u32 %s673_s8, 4  ;;  %s529_s19 = int_to_ptr.vmem [resolvable:$true] %s528_s19 }
  0xdf   :  { %v171_v28 = vpack.c.bf16 %v103_v25, %v100_v24  ;;  %s646_s7 = scalar_lea.vmem %s529_s19, 256  ;;  %p651_p1 = scmp.lt.s32.totalorder %s529_s19, %s529_s19 }
  0xe0   :  { %v170_v37 = vpack.c.bf16 %v166_v36, %v166_v36  ;;  %p647_p0 = scmp.ne.s32.totalorder %s529_s19, %s646_s7  ;;  %p652_p2 = scmp.lt.s32.totalorder %s646_s7, %s646_s7 }
  0xe1   :  { %174 = vrot.lane.b32.xlu0 %v171_v28, %s672_s4 }
  0xe2   :  { %p653_p3 = por %p652_p2, %p651_p1 }
  0xe4   :  { %p654_p4 = pnand %p653_p3, %p647_p0 }
  0xe5   :  { %224 = vrot.lane.b32.xlu0 %v172_v27, %s672_s4 }
 0x153   :  { %v175_v30 = vpop.permute.xlu0 %174 }
 0x154   :  { %v181_v31 = vsel %vm176_vm3, %v175_v30, 0 }
 0x155   :  { %588 = vmatpush3.bf16.xpose.msra.mxu0 %v181_v31 }
 0x156   :  { %599 = vmatprep.subr.bf16.mxu0 %v670_v9 }
 0x157   :  { %v225_v33 = vpop.permute.xlu0 %224 }
 0x158   :  { %v230_v35 = vsel %vm176_vm3, %v225_v33, 0 }
 0x159   :  { %594 = vmatpush3.bf16.xpose.msra.mxu1 %v230_v35 }
 0x15a   :  { %605 = vmatprep.subr.bf16.mxu1 %v670_v9 }
 0x15c   :  { %590 = vmatmul.mubr.msk.bf16.vlgmr.msra.gmra.mrb[4].mxu0 %vm176_vm3, %v169_v34 }
 0x15d   :  { %600 = vmatpush3.bf16.msra.mxu0 %v171_v28  ;;  %601 = vmatprep.mubr.msk.bf16.mxu0 %vm671_vm2, %v670_v9 }
 0x15e   :  { %611 = vmatprep.subr.bf16.mxu0 %v670_v9 }
 0x160   :  { %596 = vmatmul.mubr.msk.bf16.vlgmr.msra.gmra.mrb[4].mxu1 %vm176_vm3, %v170_v37 }
 0x161   :  { %606 = vmatpush3.bf16.msra.mxu1 %v172_v27  ;;  %607 = vmatprep.mubr.msk.bf16.mxu1 %vm671_vm2, %v670_v9 }
 0x162   :  { %619 = vmatprep.subr.bf16.mxu1 %v670_v9 }
 0x22f   :  { %v217_v38 = vpop.f32.mrb[4].mxu0 }
 0x230   :  { %v591_v39 = vpop.f32.mrb[5].mxu0  ;;  %v273_v40 = vsel %vm272_vm4, %v217_v38, -inf }
 0x231   :  { %274 = vmax.xlane.f32.xlu1 %v273_v40  ;;  %v220_v41 = vpop.f32.mrb[6].mxu0 }
 0x232   :  { %v592_v42 = vpop.f32.mrb[7].mxu0 }
 0x233   :  { %v266_v43 = vpop.f32.mrb[4].mxu1 }
 0x234   :  { %v597_v44 = vpop.f32.mrb[5].mxu1  ;;  %v276_v45 = vsel %vm272_vm4, %v266_v43, -inf }
 0x235   :  { %277 = vmax.xlane.f32.xlu1 %v276_v45  ;;  %v269_v46 = vpop.f32.mrb[6].mxu1 }
 0x236   :  { %v598_v47 = vpop.f32.mrb[7].mxu1 }
 0x2be   :  { %v275_v48 = vpop.xlane.xlu1 %274 }
 0x2bf   :  { %v279_v49 = vsub.f32 %v217_v38, %v275_v48 }
 0x2c1   :  { %v281_v50 = vmul.f32 1.442695, %v279_v49 }
 0x2c2   :  { %v278_v51 = vpop.xlane.xlu1 %277 }
 0x2c3   :  { %638 = vpow2.f32 %v281_v50  ;;  %v280_v52 = vsub.f32 %v266_v43, %v278_v51 }
 0x2c5   :  { %v283_v53 = vmul.f32 1.442695, %v280_v52 }
 0x2c7   :  { %640 = vpow2.f32 %v283_v53 }
 0x2cd   :  { %v639_v54 = vpop.eup %638 }
 0x2ce   :  { %v285_v55 = vsel %vm272_vm4, %v639_v54, 0.0 }
 0x2cf   :  { %286 = vadd.xlane.f32.xlu0 %v285_v55 }
 0x2d1   :  { %v641_v56 = vpop.eup %640 }
 0x2d2   :  { %v288_v57 = vsel %vm272_vm4, %v641_v56, 0.0 }
 0x2d3   :  { %289 = vadd.xlane.f32.xlu1 %v288_v57 }
 0x35c   :  { %v287_v58 = vpop.xlane.xlu0 %286 }
 0x35d   :  { %642 = vrcp.f32 %v287_v58 }
 0x360   :  { %v290_v59 = vpop.xlane.xlu1 %289 }
 0x361   :  { %644 = vrcp.f32 %v290_v59 }
 0x367   :  { %v643_v60 = vpop.eup %642 }
 0x368   :  { %v293_v61 = vmul.f32 %v643_v60, %v639_v54 }
 0x36a   :  { %v295_v62 = vpack.c.bf16 %v293_v61, %v293_v61 }
 0x36b   :  { %v645_v63 = vpop.eup %644 }
 0x36c   :  { %v294_v0 = vmul.f32 %v645_v63, %v641_v56  ;;  %602 = vmatmul.mubr.msk.bf16.vlgmr.msra.gmra.mrb[8].mxu0 %vm272_vm4, %v295_v62 }
 0x36d   :  { %615 = vmatprep.mubr.msk.bf16.mxu0 %vm671_vm2, %v670_v9  ;;  %612 = vmatpush3.bf16.msra.mxu0 %v634_v2 }
 0x36e   :  { %v296_v1 = vpack.c.bf16 %v294_v0, %v294_v0  ;;  %613 = vmatprep.subr.bf16.mxu0 %v670_v9 }
 0x370   :  { %608 = vmatmul.mubr.msk.bf16.vlgmr.msra.gmra.mrb[8].mxu1 %vm272_vm4, %v296_v1 }
 0x371   :  { %623 = vmatprep.mubr.msk.bf16.mxu1 %vm671_vm2, %v670_v9  ;;  %614 = vmatpush3.bf16.msra.mxu0 %v635_v3 }
 0x372   :  { %620 = vmatpush3.bf16.msra.mxu1 %v636_v14 }
 0x373   :  { %621 = vmatprep.subr.bf16.mxu1 %v670_v9  ;;  %v552_v9 = vld [vmem:[%s838_s9] ss:$0 sm:$0xff] }
 0x376   :  { %622 = vmatpush3.bf16.msra.mxu1 %v637_v15 }
 0x43f   :  { %v334_v4 = vpop.f32.mrb[8].mxu0 }
 0x440   :  { %v603_v5 = vpop.f32.mrb[9].mxu0 }
 0x441   :  { %v337_v6 = vpop.f32.mrb[10].mxu0 }
 0x442   :  { %v604_v7 = vpop.f32.mrb[11].mxu0 }
 0x443   :  { %v377_v8 = vpop.f32.mrb[8].mxu1 }
 0x444   :  { %v383_v10 = vpack.c.bf16 %v377_v8, %v334_v4  ;;  %v609_v11 = vpop.f32.mrb[9].mxu1 }
 0x445   :  { %v380_v12 = vpop.f32.mrb[10].mxu1 }
 0x446   :  { %v610_v13 = vpop.f32.mrb[11].mxu1  ;;  %616 = vmatmul.mubr.msk.bf16.vlgmr.msra.gmra.mrb[12].mxu0 %vm176_vm3, %v383_v10 }
 0x519   :  { %v444_v17 = vpop.f32.mrb[12].mxu0 }
 0x51a   :  { %v445_v18 = vadd.f32 %v548_v16, %v444_v17  ;;  %v617_v19 = vpop.f32.mrb[13].mxu0 }
 0x51b   :  { %v447_v20 = vpop.f32.mrb[14].mxu0 }
 0x51c   :  { %v448_v21 = vadd.f32 %v548_v16, %v447_v20  ;;  %v618_v22 = vpop.f32.mrb[15].mxu0  ;;  %v451_v23 = vmax.f32 %v445_v18, 0.0 }
 0x51e   :  { %v452_v24 = vmax.f32 %v448_v21, 0.0 }
 0x520   :  { %v453_v25 = vpack.c.bf16 %v452_v24, %v451_v23 }
 0x522   :  { %624 = vmatmul.mubr.msk.bf16.vlgmr.msra.gmra.mrb[12].mxu1 %vm176_vm3, %v453_v25 }
 0x5f5   :  { %v514_v26 = vpop.f32.mrb[12].mxu1 }
 0x5f6   :  { %v515_v27 = vadd.f32 %v552_v9, %v514_v26  ;;  %v625_v28 = vpop.f32.mrb[13].mxu1 }
 0x5f7   :  { %v517_v29 = vpop.f32.mrb[14].mxu1 }
 0x5f8   :  { %521 = vst [vmem:[#allocation2] sm:$0xff] %v515_v27  ;;  %v518_v30 = vadd.f32 %v552_v9, %v517_v29  ;;  %v626_v31 = vpop.f32.mrb[15].mxu1 }
 0x5fa   :  { %522 = vst [vmem:[#allocation2 + $0x8] sm:$0xff] %v518_v30 }
 0x5fb   :  { %657 = shalt.err (!%p654_p4)
}
 0x5fc   :  { %s658_s21 = scalar_lea.hbm %s839_s10, 256 }
 0x5fd   :  { %p659_p5 = scmp.ne.s32.totalorder %s839_s10, %s658_s21  ;;  %p662_p6 = scmp.lt.u32.totalorder %s658_s21, %s839_s10 }
 0x5ff   :  { %p664_p7 = pnand %p662_p6, %p659_p5 }
 0x601   :  { %667 = shalt.err (!%p664_p7)
}
 0x602   :  { %s674_s25 = smov 128   ;;  %s675_s26 = smov 8  }
 0x603   :  { %534 = dma.vmem_to_hbm [thread:$0]  %s529_s19, 256, %s839_s10, [#allocation3], %s674_s25, %s674_s25, %s675_s26  }
 0x604   :  { %668 = dma.done.wait [#allocation3], 256  }
 0x605   :  { %669 = vsyncadd [#allocation3], 4294967040 }
 0x606   :  { %538 = vsyncpa [#allocation3], 1 }

</bundles_post_ra>
